<compile_context>
chip_gen: v5e
topology: v5e:2x2
jax: 0.10.0
libtpu: 0.0.40
codegen_flags: <defaults>
</compile_context>

<pallas_src>
import jax
import jax.numpy as jnp
from jax.experimental import pallas as pl
from jax.experimental.pallas import tpu as pltpu


def dafc_kernel(z_ref, rw_t_ref, rb_ref, cw_ref, cb_ref, out_ref, a_t_ref):
    # z_ref:    (TB, H, W)           input tile (original dtype)
    # rw_t_ref: (W, W_out)           row_fc weight, pre-transposed, bf16
    # rb_ref:   (1, W_out)           row_fc bias, f32
    # cw_ref:   (H_out, H)           col_fc weight, bf16
    # cb_ref:   (H_out, 1)           col_fc bias, f32
    # out_ref:  (1, H_out, TB*W_out) lane-dense output slab, f32
    # a_t_ref:  (H, TB*W_out)        bf16 VMEM scratch: A with batch folded into lanes
    TB, H, W = z_ref.shape
    W_out = rw_t_ref.shape[1]

    # row_fc over all TB samples at once: (TB*H, W) @ (W, W_out); bf16 in, f32 accum.
    z = z_ref[...].reshape(TB * H, W).astype(jnp.bfloat16)
    a = jnp.dot(z, rw_t_ref[...], preferred_element_type=jnp.float32)
    a = jnp.tanh(a + rb_ref[...])                      # f32, (TB*H, W_out)
    a = a.astype(jnp.bfloat16)

    # Scatter A[b, h, :] -> A'[h, b*W_out:(b+1)*W_out] (batch -> lanes).  TB is a
    # compile-time constant so this unrolls into TB cheap VMEM slice stores.
    for b in range(TB):
        a_t_ref[:, b * W_out:(b + 1) * W_out] = a[b * H:(b + 1) * H, :]

    # col_fc as one lane-dense matmul: (H_out, H) @ (H, TB*W_out); bf16 in, f32 accum.
    o = jnp.dot(cw_ref[...], a_t_ref[...], preferred_element_type=jnp.float32)
    o = jnp.tanh(o + cb_ref[...])                      # f32, (H_out, TB*W_out)
    out_ref[0] = o.astype(out_ref.dtype)


def _pick_batch_tile(B, H, W, W_out):
    """Largest divisor of B that (a) pushes TB*H toward >=256 and TB*W_out toward >=128
    (MXU M / lane-dense N) while (b) keeping the per-step f32 blocks small enough to
    double-buffer comfortably on every generation (v7x: 64 MiB physical VMEM)."""
    want = max(-(-256 // max(H, 1)), -(-128 // max(W_out, 1)))      # ceil divs
    cap = max(1, (2 << 20) // max(1, 4 * H * max(W, W_out)))        # ~2 MiB per block
    target = max(1, min(B, want, cap))
    tb = 1
    for d in range(1, target + 1):
        if B % d == 0:
            tb = d
    return tb


def dafc_block(z_in, row_w, row_b, col_w, col_b):
    """z_in: (B, H, W); row_w: (W_out, W); row_b: (W_out,);
       col_w: (H_out, H); col_b: (H_out,). Returns (B, H_out, W_out) float32."""
    B, H, W = z_in.shape
    W_out = row_w.shape[0]
    H_out = col_w.shape[0]

    TB = _pick_batch_tile(B, H, W, W_out)
    num_tiles = B // TB
    lanes = TB * W_out

    # Tiny weight-side casts (and a (W_out, W) transpose): negligible cost, halves the
    # weight DMA bytes.  The activation tensor z_in is NOT touched in the wrapper.
    rw_t = row_w.T.astype(jnp.bfloat16)                 # (W, W_out)
    rb = row_b.reshape(1, W_out).astype(jnp.float32)    # (1, W_out)
    cw = col_w.astype(jnp.bfloat16)                     # (H_out, H)
    cb = col_b.reshape(H_out, 1).astype(jnp.float32)    # (H_out, 1)

    flops = 2 * B * H * W * W_out + 2 * B * H_out * H * W_out
    transcendentals = B * H * W_out + B * H_out * W_out
    bytes_accessed = (z_in.size * z_in.dtype.itemsize
                      + rw_t.size * 2 + rb.size * 4 + cw.size * 2 + cb.size * 4
                      + B * H_out * W_out * 4)

    out_slab = pl.pallas_call(
        dafc_kernel,
        out_shape=jax.ShapeDtypeStruct((num_tiles, H_out, lanes), jnp.float32),
        grid_spec=pltpu.PrefetchScalarGridSpec(
            num_scalar_prefetch=0,
            grid=(num_tiles,),
            in_specs=[
                pl.BlockSpec((TB, H, W), lambda i: (i, 0, 0)),
                pl.BlockSpec((W, W_out), lambda i: (0, 0)),
                pl.BlockSpec((1, W_out), lambda i: (0, 0)),
                pl.BlockSpec((H_out, H), lambda i: (0, 0)),
                pl.BlockSpec((H_out, 1), lambda i: (0, 0)),
            ],
            out_specs=pl.BlockSpec((1, H_out, lanes), lambda i: (i, 0, 0)),
            scratch_shapes=[pltpu.VMEM((H, lanes), jnp.bfloat16)],
        ),
        compiler_params=pltpu.CompilerParams(
            dimension_semantics=("parallel",),
        ),
        cost_estimate=pl.CostEstimate(
            flops=flops,
            transcendentals=transcendentals,
            bytes_accessed=bytes_accessed,
        ),
    )(z_in, rw_t, rb, cw, cb)

    # Layout plumbing only: unfold the batch from the lane dimension.
    out = out_slab.reshape(num_tiles, H_out, TB, W_out)
    out = out.transpose(0, 2, 1, 3).reshape(B, H_out, W_out)
    return out


def dafc_reference(z_in, row_w, row_b, col_w, col_b):
    """Plain-JAX f32 mirror of the PyTorch forward (for correctness check)."""
    z = z_in.astype(jnp.float32)
    B, H, W = z.shape
    zr = z.reshape(-1, W)
    zr = jnp.tanh(zr @ row_w.T + row_b)               # (B*H, W_out)
    zr = zr.reshape(B, H, -1).transpose(0, 2, 1)      # (B, W_out, H)
    zr2 = zr.reshape(-1, H)
    zo = jnp.tanh(zr2 @ col_w.T + col_b)              # (B*W_out, H_out)
    zo = zo.reshape(B, -1, zo.shape[-1])              # (B, W_out, H_out)
    return zo.transpose(0, 2, 1)                      # (B, H_out, W_out)


if __name__ == "__main__":
    B, H, W = 32, 16, 16
    H_out, W_out = 8, 8

    key = jax.random.PRNGKey(0)
    k1, k2, k3, k4, k5 = jax.random.split(key, 5)

    # deterministic synthetic params (nn.Linear: weight (out, in), bias (out,))
    bound_r = 1.0 / jnp.sqrt(W)
    bound_c = 1.0 / jnp.sqrt(H)
    row_w = jax.random.uniform(k1, (W_out, W), jnp.float32, -bound_r, bound_r)
    row_b = jax.random.uniform(k2, (W_out,), jnp.float32, -bound_r, bound_r)
    col_w = jax.random.uniform(k3, (H_out, H), jnp.float32, -bound_c, bound_c)
    col_b = jax.random.uniform(k4, (H_out,), jnp.float32, -bound_c, bound_c)

    z_in = jax.random.normal(k5, (B, H, W), jnp.float32)

    out = dafc_block(z_in, row_w, row_b, col_w, col_b)
    out = jax.block_until_ready(out)

    ref = dafc_reference(z_in, row_w, row_b, col_w, col_b)
    assert out.shape == (B, H_out, W_out), out.shape
    # bf16 matmul inputs (f32 accumulation) -> loosened tolerance vs the f32 reference.
    assert jnp.allclose(out, ref, atol=5e-2), float(jnp.max(jnp.abs(out - ref)))

    print("KERNEL_OK")
</pallas_src>

<mosaic_0001>
module attributes {stable_mosaic.version = 11 : i64} {
  func.func @dafc_kernel(%arg0: i32, %arg1: memref<16x16x16xf32, #tpu.memory_space<vmem>>, %arg2: memref<16x8xbf16, #tpu.memory_space<vmem>>, %arg3: memref<1x8xf32, #tpu.memory_space<vmem>>, %arg4: memref<8x16xbf16, #tpu.memory_space<vmem>>, %arg5: memref<8x1xf32, #tpu.memory_space<vmem>>, %arg6: memref<1x8x128xf32, #tpu.memory_space<vmem>>, %arg7: memref<16x128xbf16, #tpu.memory_space<vmem>>) attributes {dimension_semantics = [#tpu.dimension_semantics<parallel>], iteration_bounds = array<i64: 2>, scalar_prefetch = 0 : i64, scratch_operands = 1 : i64, tpu.core_type = #tpu.core_type<tc>, window_params = [{transform_indices = @transform_0, window_bounds = array<i64: 16, 16, 16>}, {pipeline_mode = #tpu.pipeline_mode<synchronous>, transform_indices = @transform_1, window_bounds = array<i64: 16, 8>}, {pipeline_mode = #tpu.pipeline_mode<synchronous>, transform_indices = @transform_2, window_bounds = array<i64: 1, 8>}, {pipeline_mode = #tpu.pipeline_mode<synchronous>, transform_indices = @transform_3, window_bounds = array<i64: 8, 16>}, {pipeline_mode = #tpu.pipeline_mode<synchronous>, transform_indices = @transform_4, window_bounds = array<i64: 8, 1>}, {transform_indices = @transform_5, window_bounds = array<i64: 1, 8, 128>}]} {
    %c0 = arith.constant 0 : index
    %c0_0 = arith.constant 0 : index
    %c0_1 = arith.constant 0 : index
    %0 = vector.load %arg1[%c0, %c0_0, %c0_1] : memref<16x16x16xf32, #tpu.memory_space<vmem>>, vector<16x16x16xf32>
    %1 = vector.shape_cast %0 : vector<16x16x16xf32> to vector<256x16xf32>
    %2 = arith.truncf %1 : vector<256x16xf32> to vector<256x16xbf16>
    %c0_2 = arith.constant 0 : index
    %c0_3 = arith.constant 0 : index
    %3 = vector.load %arg2[%c0_2, %c0_3] : memref<16x8xbf16, #tpu.memory_space<vmem>>, vector<16x8xbf16>
    %cst = arith.constant dense<0.000000e+00> : vector<256x8xf32>
    %4 = tpu.matmul %2, %3, %cst {dimension_numbers = #tpu.dot_dimension_numbers<[1], [0], [0], [1], [0, 0, 1, 1], [], []>} : vector<256x16xbf16>, vector<16x8xbf16>, vector<256x8xf32> -> vector<256x8xf32>
    %c0_4 = arith.constant 0 : index
    %c0_5 = arith.constant 0 : index
    %5 = vector.load %arg3[%c0_4, %c0_5] : memref<1x8xf32, #tpu.memory_space<vmem>>, vector<1x8xf32>
    %6 = vector.broadcast %5 : vector<1x8xf32> to vector<256x8xf32>
    %7 = arith.addf %4, %6 : vector<256x8xf32>
    %8 = math.tanh %7 : vector<256x8xf32>
    %9 = arith.truncf %8 : vector<256x8xf32> to vector<256x8xbf16>
    %10 = vector.extract_strided_slice %9 {offsets = [0, 0], sizes = [16, 8], strides = [1, 1]} : vector<256x8xbf16> to vector<16x8xbf16>
    %c0_6 = arith.constant 0 : index
    %c0_7 = arith.constant 0 : index
    %11 = vector.load %arg7[%c0_6, %c0_7] : memref<16x128xbf16, #tpu.memory_space<vmem>>, vector<16x8xbf16>
    tpu.vector_store %arg7[%c0_6, %c0_7], %10 {strides = array<i32>} : memref<16x128xbf16, #tpu.memory_space<vmem>>, vector<16x8xbf16>,
    %12 = vector.extract_strided_slice %9 {offsets = [16, 0], sizes = [16, 8], strides = [1, 1]} : vector<256x8xbf16> to vector<16x8xbf16>
    %c0_8 = arith.constant 0 : index
    %c8 = arith.constant 8 : index
    %13 = vector.load %arg7[%c0_8, %c8] : memref<16x128xbf16, #tpu.memory_space<vmem>>, vector<16x8xbf16>
    tpu.vector_store %arg7[%c0_8, %c8], %12 {strides = array<i32>} : memref<16x128xbf16, #tpu.memory_space<vmem>>, vector<16x8xbf16>,
    %14 = vector.extract_strided_slice %9 {offsets = [32, 0], sizes = [16, 8], strides = [1, 1]} : vector<256x8xbf16> to vector<16x8xbf16>
    %c0_9 = arith.constant 0 : index
    %c16 = arith.constant 16 : index
    %15 = vector.load %arg7[%c0_9, %c16] : memref<16x128xbf16, #tpu.memory_space<vmem>>, vector<16x8xbf16>
    tpu.vector_store %arg7[%c0_9, %c16], %14 {strides = array<i32>} : memref<16x128xbf16, #tpu.memory_space<vmem>>, vector<16x8xbf16>,
    %16 = vector.extract_strided_slice %9 {offsets = [48, 0], sizes = [16, 8], strides = [1, 1]} : vector<256x8xbf16> to vector<16x8xbf16>
    %c0_10 = arith.constant 0 : index
    %c24 = arith.constant 24 : index
    %17 = vector.load %arg7[%c0_10, %c24] : memref<16x128xbf16, #tpu.memory_space<vmem>>, vector<16x8xbf16>
    tpu.vector_store %arg7[%c0_10, %c24], %16 {strides = array<i32>} : memref<16x128xbf16, #tpu.memory_space<vmem>>, vector<16x8xbf16>,
    %18 = vector.extract_strided_slice %9 {offsets = [64, 0], sizes = [16, 8], strides = [1, 1]} : vector<256x8xbf16> to vector<16x8xbf16>
    %c0_11 = arith.constant 0 : index
    %c32 = arith.constant 32 : index
    %19 = vector.load %arg7[%c0_11, %c32] : memref<16x128xbf16, #tpu.memory_space<vmem>>, vector<16x8xbf16>
    tpu.vector_store %arg7[%c0_11, %c32], %18 {strides = array<i32>} : memref<16x128xbf16, #tpu.memory_space<vmem>>, vector<16x8xbf16>,
    %20 = vector.extract_strided_slice %9 {offsets = [80, 0], sizes = [16, 8], strides = [1, 1]} : vector<256x8xbf16> to vector<16x8xbf16>
    %c0_12 = arith.constant 0 : index
    %c40 = arith.constant 40 : index
    %21 = vector.load %arg7[%c0_12, %c40] : memref<16x128xbf16, #tpu.memory_space<vmem>>, vector<16x8xbf16>
    tpu.vector_store %arg7[%c0_12, %c40], %20 {strides = array<i32>} : memref<16x128xbf16, #tpu.memory_space<vmem>>, vector<16x8xbf16>,
    %22 = vector.extract_strided_slice %9 {offsets = [96, 0], sizes = [16, 8], strides = [1, 1]} : vector<256x8xbf16> to vector<16x8xbf16>
    %c0_13 = arith.constant 0 : index
    %c48 = arith.constant 48 : index
    %23 = vector.load %arg7[%c0_13, %c48] : memref<16x128xbf16, #tpu.memory_space<vmem>>, vector<16x8xbf16>
    tpu.vector_store %arg7[%c0_13, %c48], %22 {strides = array<i32>} : memref<16x128xbf16, #tpu.memory_space<vmem>>, vector<16x8xbf16>,
    %24 = vector.extract_strided_slice %9 {offsets = [112, 0], sizes = [16, 8], strides = [1, 1]} : vector<256x8xbf16> to vector<16x8xbf16>
    %c0_14 = arith.constant 0 : index
    %c56 = arith.constant 56 : index
    %25 = vector.load %arg7[%c0_14, %c56] : memref<16x128xbf16, #tpu.memory_space<vmem>>, vector<16x8xbf16>
    tpu.vector_store %arg7[%c0_14, %c56], %24 {strides = array<i32>} : memref<16x128xbf16, #tpu.memory_space<vmem>>, vector<16x8xbf16>,
    %26 = vector.extract_strided_slice %9 {offsets = [128, 0], sizes = [16, 8], strides = [1, 1]} : vector<256x8xbf16> to vector<16x8xbf16>
    %c0_15 = arith.constant 0 : index
    %c64 = arith.constant 64 : index
    %27 = vector.load %arg7[%c0_15, %c64] : memref<16x128xbf16, #tpu.memory_space<vmem>>, vector<16x8xbf16>
    tpu.vector_store %arg7[%c0_15, %c64], %26 {strides = array<i32>} : memref<16x128xbf16, #tpu.memory_space<vmem>>, vector<16x8xbf16>,
    %28 = vector.extract_strided_slice %9 {offsets = [144, 0], sizes = [16, 8], strides = [1, 1]} : vector<256x8xbf16> to vector<16x8xbf16>
    %c0_16 = arith.constant 0 : index
    %c72 = arith.constant 72 : index
    %29 = vector.load %arg7[%c0_16, %c72] : memref<16x128xbf16, #tpu.memory_space<vmem>>, vector<16x8xbf16>
    tpu.vector_store %arg7[%c0_16, %c72], %28 {strides = array<i32>} : memref<16x128xbf16, #tpu.memory_space<vmem>>, vector<16x8xbf16>,
    %30 = vector.extract_strided_slice %9 {offsets = [160, 0], sizes = [16, 8], strides = [1, 1]} : vector<256x8xbf16> to vector<16x8xbf16>
    %c0_17 = arith.constant 0 : index
    %c80 = arith.constant 80 : index
    %31 = vector.load %arg7[%c0_17, %c80] : memref<16x128xbf16, #tpu.memory_space<vmem>>, vector<16x8xbf16>
    tpu.vector_store %arg7[%c0_17, %c80], %30 {strides = array<i32>} : memref<16x128xbf16, #tpu.memory_space<vmem>>, vector<16x8xbf16>,
    %32 = vector.extract_strided_slice %9 {offsets = [176, 0], sizes = [16, 8], strides = [1, 1]} : vector<256x8xbf16> to vector<16x8xbf16>
    %c0_18 = arith.constant 0 : index
    %c88 = arith.constant 88 : index
    %33 = vector.load %arg7[%c0_18, %c88] : memref<16x128xbf16, #tpu.memory_space<vmem>>, vector<16x8xbf16>
    tpu.vector_store %arg7[%c0_18, %c88], %32 {strides = array<i32>} : memref<16x128xbf16, #tpu.memory_space<vmem>>, vector<16x8xbf16>,
    %34 = vector.extract_strided_slice %9 {offsets = [192, 0], sizes = [16, 8], strides = [1, 1]} : vector<256x8xbf16> to vector<16x8xbf16>
    %c0_19 = arith.constant 0 : index
    %c96 = arith.constant 96 : index
    %35 = vector.load %arg7[%c0_19, %c96] : memref<16x128xbf16, #tpu.memory_space<vmem>>, vector<16x8xbf16>
    tpu.vector_store %arg7[%c0_19, %c96], %34 {strides = array<i32>} : memref<16x128xbf16, #tpu.memory_space<vmem>>, vector<16x8xbf16>,
    %36 = vector.extract_strided_slice %9 {offsets = [208, 0], sizes = [16, 8], strides = [1, 1]} : vector<256x8xbf16> to vector<16x8xbf16>
    %c0_20 = arith.constant 0 : index
    %c104 = arith.constant 104 : index
    %37 = vector.load %arg7[%c0_20, %c104] : memref<16x128xbf16, #tpu.memory_space<vmem>>, vector<16x8xbf16>
    tpu.vector_store %arg7[%c0_20, %c104], %36 {strides = array<i32>} : memref<16x128xbf16, #tpu.memory_space<vmem>>, vector<16x8xbf16>,
    %38 = vector.extract_strided_slice %9 {offsets = [224, 0], sizes = [16, 8], strides = [1, 1]} : vector<256x8xbf16> to vector<16x8xbf16>
    %c0_21 = arith.constant 0 : index
    %c112 = arith.constant 112 : index
    %39 = vector.load %arg7[%c0_21, %c112] : memref<16x128xbf16, #tpu.memory_space<vmem>>, vector<16x8xbf16>
    tpu.vector_store %arg7[%c0_21, %c112], %38 {strides = array<i32>} : memref<16x128xbf16, #tpu.memory_space<vmem>>, vector<16x8xbf16>,
    %40 = vector.extract_strided_slice %9 {offsets = [240, 0], sizes = [16, 8], strides = [1, 1]} : vector<256x8xbf16> to vector<16x8xbf16>
    %c0_22 = arith.constant 0 : index
    %c120 = arith.constant 120 : index
    %41 = vector.load %arg7[%c0_22, %c120] : memref<16x128xbf16, #tpu.memory_space<vmem>>, vector<16x8xbf16>
    tpu.vector_store %arg7[%c0_22, %c120], %40 {strides = array<i32>} : memref<16x128xbf16, #tpu.memory_space<vmem>>, vector<16x8xbf16>,
    %c0_23 = arith.constant 0 : index
    %c0_24 = arith.constant 0 : index
    %42 = vector.load %arg4[%c0_23, %c0_24] : memref<8x16xbf16, #tpu.memory_space<vmem>>, vector<8x16xbf16>
    %c0_25 = arith.constant 0 : index
    %c0_26 = arith.constant 0 : index
    %43 = vector.load %arg7[%c0_25, %c0_26] : memref<16x128xbf16, #tpu.memory_space<vmem>>, vector<16x128xbf16>
    %cst_27 = arith.constant dense<0.000000e+00> : vector<8x128xf32>
    %44 = tpu.matmul %42, %43, %cst_27 {dimension_numbers = #tpu.dot_dimension_numbers<[1], [0], [0], [1], [0, 0, 1, 1], [], []>} : vector<8x16xbf16>, vector<16x128xbf16>, vector<8x128xf32> -> vector<8x128xf32>
    %c0_28 = arith.constant 0 : index
    %c0_29 = arith.constant 0 : index
    %45 = vector.load %arg5[%c0_28, %c0_29] : memref<8x1xf32, #tpu.memory_space<vmem>>, vector<8x1xf32>
    %46 = vector.broadcast %45 : vector<8x1xf32> to vector<8x128xf32>
    %47 = arith.addf %44, %46 : vector<8x128xf32>
    %48 = math.tanh %47 : vector<8x128xf32>
    %c0_30 = arith.constant 0 : index
    %c0_31 = arith.constant 0 : index
    %c0_32 = arith.constant 0 : index
    %49 = vector.load %arg6[%c0_30, %c0_31, %c0_32] : memref<1x8x128xf32, #tpu.memory_space<vmem>>, vector<1x8x128xf32>
    %50 = vector.shape_cast %49 : vector<1x8x128xf32> to vector<8x128xf32>
    %51 = vector.shape_cast %48 : vector<8x128xf32> to vector<1x8x128xf32>
    tpu.vector_store %arg6[%c0_30, %c0_31, %c0_32], %51 {strides = array<i32>} : memref<1x8x128xf32, #tpu.memory_space<vmem>>, vector<1x8x128xf32>,
    return
  }
  func.func @transform_0(%arg0: i32) -> (i32, i32, i32) {
    %c0_i32 = arith.constant 0 : i32
    %c0_i32_0 = arith.constant 0 : i32
    %c0_i32_1 = arith.constant 0 : i32
    return %arg0, %c0_i32, %c0_i32_0 : i32, i32, i32
  }
  func.func @transform_1(%arg0: i32) -> (i32, i32) {
    %c0_i32 = arith.constant 0 : i32
    %c0_i32_0 = arith.constant 0 : i32
    %c0_i32_1 = arith.constant 0 : i32
    return %c0_i32, %c0_i32_0 : i32, i32
  }
  func.func @transform_2(%arg0: i32) -> (i32, i32) {
    %c0_i32 = arith.constant 0 : i32
    %c0_i32_0 = arith.constant 0 : i32
    %c0_i32_1 = arith.constant 0 : i32
    return %c0_i32, %c0_i32_0 : i32, i32
  }
  func.func @transform_3(%arg0: i32) -> (i32, i32) {
    %c0_i32 = arith.constant 0 : i32
    %c0_i32_0 = arith.constant 0 : i32
    %c0_i32_1 = arith.constant 0 : i32
    return %c0_i32, %c0_i32_0 : i32, i32
  }
  func.func @transform_4(%arg0: i32) -> (i32, i32) {
    %c0_i32 = arith.constant 0 : i32
    %c0_i32_0 = arith.constant 0 : i32
    %c0_i32_1 = arith.constant 0 : i32
    return %c0_i32, %c0_i32_0 : i32, i32
  }
  func.func @transform_5(%arg0: i32) -> (i32, i32, i32) {
    %c0_i32 = arith.constant 0 : i32
    %c0_i32_0 = arith.constant 0 : i32
    %c0_i32_1 = arith.constant 0 : i32
    return %arg0, %c0_i32, %c0_i32_0 : i32, i32, i32
  }
}

</mosaic_0001>

<bundles_post_ra>
// kernel: tpu_custom_call.1
= control target key start
LH: loop header
LB: loop body
LE: loop exit
PB: predicated region body
PF: predicated region fallthrough
CT: control target
= control target key end

     0   :  { %10 = vsyncpa [#allocation4], 0  ;;  %s1246_s0 = inlined_call_operand.vmem [shape: f32[32,16,16], index: 0, kind: input, shape index: {}]   ;;  %s1247_s1 = inlined_call_operand.vmem [shape: bf16[16,8], index: 1, kind: input, shape index: {}]   ;;  %s1248_s2 = inlined_call_operand.vmem [shape: f32[1,8], index: 2, kind: input, shape index: {}]   ;;  %s1249_s3 = inlined_call_operand.vmem [shape: bf16[8,16], index: 3, kind: input, shape index: {}]   ;;  %s1250_s4 = inlined_call_operand.vmem [shape: f32[8,1], index: 4, kind: input, shape index: {}]   ;;  %s1251_s5 = inlined_call_operand.hbm [shape: f32[2,8,128], index: 5, kind: output, shape index: {}]  }
   0x1   :  { %12 = vsyncpa [#allocation4 + $0x1], 0  ;;  %s1043_s18 = smov 0   ;;  %s1045_s19 = smov 0  }
   0x2   :  { %s1047_s20 = smov 0   ;;  %s1049_s21 = smov 0  }
   0x3 LB: > { %s1064_s22 = sadd.s32 4294967295, %s995_s21   ;;  %s767_s23 = sadd.s32 4294967294, %s995_s21   ;;  %s995_s21 = sphi %s1049_s21, %s1257_s21   ;;  %s991_s20 = sphi %s1047_s20, %s1256_s20   ;;  %s987_s19 = sphi %s1045_s19, %s1255_s19   ;;  %s983_s18 = sphi %s1043_s18, %s1254_s18  }
   0x4   : > { %s1068_s24 = sadd.s32 1, %s995_s21   ;;  %s135_s25 = sadd.s32 1, %s991_s20 }
   0x5   : > { %s132_s26 = ssub.s32 %s995_s21, %s1068_s24  ;;  %p145_p0 = scmp.ne.s32.totalorder %s991_s20, %s987_s19 }
   0x6   : > { %p133_p1 = scmp.eq.s32.totalorder %s132_s26, 0  ;;  %p146_p2 = scmp.eq.s32.totalorder %s1064_s22, 1 }
   0x7   : > { %p151_p3 = scmp.ne.s32.totalorder %s987_s19, %s983_s18  ;;  %p152_p4 = scmp.eq.s32.totalorder %s767_s23, 1 }
   0x8   : > { %s1079_s27 = scalar_select %p133_p1, %s991_s20, %s135_s25  }
   0x9   : > { %p1081_p5 = por %p146_p2, %p145_p0  ;;  %p1085_p6 = por %p152_p4, %p151_p3 }
   0xa   : > { %p770_p7 = scmp.ge.s32.totalorder %s995_s21, 1  ;;  %p192_p8 = scmp.lt.s32.totalorder %s995_s21, 3 }
   0xc   : > { %p193_p9 = pnand %p770_p7, %p192_p8 }
   0xd   : > { %s772_s7 = sshll.u32 (!%p193_p9), %s1064_s22, 4  ;;  %s997_s14 = smov (!%p193_p9), 40  }
   0xe   : > { %196 = sbr.rel (%p193_p9) target bundleno = 516 (0x204), region = 40  ;;  %p222_p10 = scmp.lt.s32.totalorder (!%p193_p9), %s772_s7, 31 }
   0xf   : > { %s998_s15 = smov (!%p193_p9), 48   ;;  %s999_s16 = smov (!%p193_p9), 88  }
  0x10   : > { %s1000_s17 = smov (!%p193_p9), 96   ;;  %s1001_s23 = smov (!%p193_p9), 8  }
  0x11   : > { %s1002_s25 = smov (!%p193_p9), 56   ;;  %s1003_s26 = smov (!%p193_p9), 16  }
  0x12   : > { %s1004_s30 = smov (!%p193_p9), 64   ;;  %s1005_s6 = smov (!%p193_p9), 24  }
  0x13   : > { %v805_v0 = vld [vmem:[%s1247_s1] sm:$0xff]  ;;  %s1259_s7 = smov (!%p222_p10, %s772_s7), 31  ;;  %vm289_vm0 = vcmask 130048   ;;  %vm491_vm1 = vcmask 60416   ;;  %s1008_s9 = smov 72   ;;  %vm502_vm2 = vcmask 126016  }
  0x14   : > { %345 = vmatpush.bf16.msra.mxu0 %v805_v0  ;;  %807 = vmatpush.bf16.msra.mxu1 %v805_v0  ;;  %s804_s8 = sshll.u32 %s1259_s7, 4  ;;  %v1151_v49 = vld [vmem:[%s1248_s2] ss:$0 sm:$0xff]  ;;  %s1006_s7 = smov 104   ;;  %vm513_vm3 = vcmask 191616   ;;  %vm524_vm4 = vcmask 257216  }
  0x15   : > { %808 = vmatpush.bf16.msra.mxu2 %v805_v0  ;;  %809 = vmatpush.bf16.msra.mxu3 %v805_v0  ;;  %s1098_s11 = scalar_lea.vmem %s1246_s0, %s804_s8  ;;  %s1007_s8 = smov 112   ;;  %vm535_vm5 = vcmask 322816   ;;  %vm546_vm6 = vcmask 388416   ;;  %vm557_vm7 = vcmask 454016   ;;  %vm568_vm8 = vcmask 519616  }
  0x16   : > { %v229_v1 = vld [vmem:[%s1098_s11] sm:$0xff]  ;;  %v230_v2 = vld [vmem:[%s1098_s11 + $0x8] sm:$0xff]  ;;  %v239_v3 = vld [vmem:[%s1098_s11 + $0x50] sm:$0xff]  ;;  %s1009_s10 = smov 32   ;;  %s1011_s12 = smov 120   ;;  %vm579_vm9 = vcmask 585216  }
  0x17   : > { %v261_v4 = vpack.c.bf16 %v230_v2, %v229_v1  ;;  %v240_v5 = vld [vmem:[%s1098_s11 + $0x58] sm:$0xff]  ;;  %v241_v6 = vld [vmem:[%s1098_s11 + $0x60] sm:$0xff]  ;;  %v242_v7 = vld [vmem:[%s1098_s11 + $0x68] sm:$0xff]  ;;  %vm590_vm10 = vcmask 650816   ;;  %vm601_vm11 = vcmask 716416   ;;  %vm612_vm12 = vcmask 782016  }
  0x18   : > { %v266_v8 = vpack.c.bf16 %v240_v5, %v239_v3  ;;  %v267_v9 = vpack.c.bf16 %v242_v7, %v241_v6  ;;  %v251_v10 = vld [vmem:[%s1098_s11 + $0xb0] sm:$0xff]  ;;  %v252_v11 = vld [vmem:[%s1098_s11 + $0xb8] sm:$0xff]  ;;  %v253_v17 = vld [vmem:[%s1098_s11 + $0xc0] sm:$0xff]  ;;  %vm623_vm13 = vcmask 847616   ;;  %vm634_vm14 = vcmask 913216  }
  0x19   : > { %779 = vmatmul.msk.bf16.vlgmr.msra.gmra.mxu0 %vm289_vm0, %v261_v4  ;;  %v272_v12 = vpack.c.bf16 %v252_v11, %v251_v10  ;;  %v231_v13 = vld [vmem:[%s1098_s11 + $0x10] sm:$0xff]  ;;  %v232_v14 = vld [vmem:[%s1098_s11 + $0x18] sm:$0xff]  ;;  %v254_v18 = vld [vmem:[%s1098_s11 + $0xc8] sm:$0xff]  ;;  %vm656_vm15 = vcmask 1044416  }
  0x1a   : > { %784 = vmatmul.msk.bf16.vlgmr.msra.gmra.mxu1 %vm289_vm0, %v266_v8  ;;  %785 = vmatmul.msk.bf16.vlgmr.msra.gmra.mxu2 %vm289_vm0, %v267_v9  ;;  %v243_v15 = vld [vmem:[%s1098_s11 + $0x70] sm:$0xff]  ;;  %v244_v16 = vld [vmem:[%s1098_s11 + $0x78] sm:$0xff]  ;;  %v262_v19 = vpack.c.bf16 %v232_v14, %v231_v13  ;;  %v273_v21 = vpack.c.bf16 %v254_v18, %v253_v17  ;;  %v233_v22 = vld [vmem:[%s1098_s11 + $0x20] sm:$0xff] }
  0x1b   : > { %790 = vmatmul.msk.bf16.vlgmr.msra.gmra.mxu3 %vm289_vm0, %v272_v12  ;;  %v268_v20 = vpack.c.bf16 %v244_v16, %v243_v15  ;;  %v234_v23 = vld [vmem:[%s1098_s11 + $0x28] sm:$0xff]  ;;  %v245_v24 = vld [vmem:[%s1098_s11 + $0x80] sm:$0xff]  ;;  %v255_v26 = vld [vmem:[%s1098_s11 + $0xd0] sm:$0xff] }
  0x1c   : > { %v246_v25 = vld [vmem:[%s1098_s11 + $0x88] sm:$0xff]  ;;  %v256_v27 = vld [vmem:[%s1098_s11 + $0xd8] sm:$0xff]  ;;  %v263_v28 = vpack.c.bf16 %v234_v23, %v233_v22  ;;  %v235_v31 = vld [vmem:[%s1098_s11 + $0x30] sm:$0xff] }
  0x1d   : > { %v269_v29 = vpack.c.bf16 %v246_v25, %v245_v24  ;;  %v274_v30 = vpack.c.bf16 %v256_v27, %v255_v26  ;;  %v236_v32 = vld [vmem:[%s1098_s11 + $0x38] sm:$0xff]  ;;  %v247_v33 = vld [vmem:[%s1098_s11 + $0x90] sm:$0xff]  ;;  %v257_v35 = vld [vmem:[%s1098_s11 + $0xe0] sm:$0xff] }
  0x1e   : > { %v248_v34 = vld [vmem:[%s1098_s11 + $0x98] sm:$0xff]  ;;  %v258_v36 = vld [vmem:[%s1098_s11 + $0xe8] sm:$0xff]  ;;  %v264_v37 = vpack.c.bf16 %v236_v32, %v235_v31  ;;  %v237_v40 = vld [vmem:[%s1098_s11 + $0x40] sm:$0xff] }
  0x1f   : > { %v270_v38 = vpack.c.bf16 %v248_v34, %v247_v33  ;;  %v275_v39 = vpack.c.bf16 %v258_v36, %v257_v35  ;;  %v238_v41 = vld [vmem:[%s1098_s11 + $0x48] sm:$0xff]  ;;  %v249_v42 = vld [vmem:[%s1098_s11 + $0xa0] sm:$0xff]  ;;  %v259_v44 = vld [vmem:[%s1098_s11 + $0xf0] sm:$0xff] }
  0x20   : > { %v250_v43 = vld [vmem:[%s1098_s11 + $0xa8] sm:$0xff]  ;;  %v260_v45 = vld [vmem:[%s1098_s11 + $0xf8] sm:$0xff]  ;;  %v265_v46 = vpack.c.bf16 %v238_v41, %v237_v40  ;;  %s1010_s11 = smov 80  }
  0x21   : > { %v271_v47 = vpack.c.bf16 %v250_v43, %v249_v42  ;;  %v276_v48 = vpack.c.bf16 %v260_v45, %v259_v44 }
  0x29   : > { %780 = vmatmul.msk.bf16.gmra.mxu0 %vm289_vm0, %v262_v19 }
  0x2a   : > { %786 = vmatmul.msk.bf16.gmra.mxu2 %vm289_vm0, %v268_v20 }
  0x2b   : > { %791 = vmatmul.msk.bf16.gmra.mxu3 %vm289_vm0, %v273_v21 }
  0x39   : > { %781 = vmatmul.msk.bf16.gmra.mxu0 %vm289_vm0, %v263_v28 }
  0x3a   : > { %787 = vmatmul.msk.bf16.gmra.mxu2 %vm289_vm0, %v269_v29 }
  0x3b   : > { %792 = vmatmul.msk.bf16.gmra.mxu3 %vm289_vm0, %v274_v30 }
  0x49   : > { %782 = vmatmul.msk.bf16.gmra.mxu0 %vm289_vm0, %v264_v37 }
  0x4a   : > { %788 = vmatmul.msk.bf16.gmra.mxu2 %vm289_vm0, %v270_v38 }
  0x4b   : > { %793 = vmatmul.msk.bf16.gmra.mxu3 %vm289_vm0, %v275_v39 }
  0x59   : > { %783 = vmatmul.msk.bf16.gmra.mxu0 %vm289_vm0, %v265_v46 }
  0x5a   : > { %789 = vmatmul.msk.bf16.gmra.mxu2 %vm289_vm0, %v271_v47 }
  0x5b   : > { %794 = vmatmul.msk.bf16.gmra.mxu3 %vm289_vm0, %v276_v48 }
  0x96   : > { %v347_v50 = vpop.f32.mrf.mxu0 }
  0x97   : > { %v348_v51 = vadd.f32 %v1151_v49, %v347_v50  ;;  %v372_v52 = vpop.f32.mrf.mxu1 }
  0x98   : > { %v373_v53 = vadd.f32 %v1151_v49, %v372_v52 }
  0x99   : > { %867 = vtanh.f32 %v348_v51 }
  0x9a   : > { %869 = vtanh.f32 %v373_v53 }
  0x9d   : > { %v377_v54 = vpop.f32.mrf.mxu2 }
  0x9e   : > { %v378_v55 = vadd.f32 %v1151_v49, %v377_v54  ;;  %v402_v56 = vpop.f32.mrf.mxu3  ;;  %v349_v57 = vpop.f32.mrf.mxu0 }
  0x9f   : > { %v868_v58 = vpop.eup %867  ;;  %v403_v59 = vadd.f32 %v1151_v49, %v402_v56  ;;  %v350_v60 = vadd.f32 %v1151_v49, %v349_v57  ;;  %v374_v61 = vpop.f32.mrf.mxu1 }
  0xa0   : > { %v870_v62 = vpop.eup %869  ;;  %v459_v63 = vpack.c.bf16 %v868_v58, %v868_v58  ;;  %871 = vtanh.f32 %v378_v55  ;;  %v375_v0 = vadd.f32 %v1151_v49, %v374_v61 }
  0xa1   : > { %873 = vtanh.f32 %v403_v59  ;;  %v469_v1 = vpack.c.bf16 %v870_v62, %v870_v62 }
  0xa2   : > { %875 = vtanh.f32 %v350_v60  ;;  %492 = vst.msk [vmem:[#allocation2] sm:$0xf] %vm491_vm1, %v459_v63 }
  0xa3   : > { %877 = vtanh.f32 %v375_v0  ;;  %540 = vrot.lane.b32.xlu2 %v469_v1, %s997_s14 }
  0xa5   : > { %v379_v2 = vpop.f32.mrf.mxu2 }
  0xa6   : > { %v872_v3 = vpop.eup %871  ;;  %v380_v4 = vadd.f32 %v1151_v49, %v379_v2  ;;  %v404_v5 = vpop.f32.mrf.mxu3 }
  0xa7   : > { %v352_v6 = vpop.f32.mrf.mxu0  ;;  %v874_v7 = vpop.eup %873  ;;  %v405_v8 = vadd.f32 %v1151_v49, %v404_v5  ;;  %v471_v9 = vpack.c.bf16 %v872_v3, %v872_v3 }
  0xa8   : > { %v876_v10 = vpop.eup %875  ;;  %v481_v11 = vpack.c.bf16 %v874_v7, %v874_v7  ;;  %879 = vtanh.f32 %v380_v4  ;;  %v353_v15 = vadd.f32 %v1151_v49, %v352_v6 }
  0xa9   : > { %v878_v12 = vpop.eup %877  ;;  %v460_v13 = vpack.c.bf16 %v876_v10, %v876_v10  ;;  %881 = vtanh.f32 %v405_v8  ;;  %551 = vrot.lane.b32.xlu1 %v471_v9, %s998_s15 }
  0xaa   : > { %v470_v14 = vpack.c.bf16 %v878_v12, %v878_v12  ;;  %883 = vtanh.f32 %v353_v15 }
  0xab   : > { %606 = vrot.lane.b32.xlu2 %v481_v11, %s999_s16  ;;  %493 = vst.msk [vmem:[#allocation2 + $0x4] sm:$0xf] %vm491_vm1, %v460_v13  ;;  %vm645_vm1 = vcmask 978816  }
  0xac   : > { %542 = vrot.lane.b32.xlu0 %v470_v14, %s997_s14  ;;  %s953_s14 = scalar_lea.hbm %s1251_s5, 16 }
  0xad   : > { %v382_v16 = vpop.f32.mrf.mxu2 }
  0xae   : > { %v880_v17 = vpop.eup %879  ;;  %v407_v18 = vpop.f32.mrf.mxu3  ;;  %v383_v24 = vadd.f32 %v1151_v49, %v382_v16 }
  0xaf   : > { %v354_v19 = vpop.f32.mrf.mxu0  ;;  %v882_v20 = vpop.eup %881  ;;  %v408_v21 = vadd.f32 %v1151_v49, %v407_v18  ;;  %v472_v22 = vpack.c.bf16 %v880_v17, %v880_v17 }
  0xb0   : > { %v482_v23 = vpack.c.bf16 %v882_v20, %v882_v20  ;;  %v884_v26 = vpop.eup %883  ;;  %v355_v36 = vadd.f32 %v1151_v49, %v354_v19 }
  0xb1   : > { %885 = vtanh.f32 %v408_v21  ;;  %v461_v33 = vpack.c.bf16 %v884_v26, %v884_v26 }
  0xb2   : > { %887 = vtanh.f32 %v383_v24 }
  0xb3   : > { %553 = vrot.lane.b32.xlu2 %v472_v22, %s998_s15 }
  0xb4   : > { %608 = vrot.lane.b32.xlu0 %v482_v23, %s999_s16 }
  0xb5   : > { %v384_v25 = vpop.f32.mrf.mxu2 }
  0xb6   : > { %v385_v27 = vadd.f32 %v1151_v49, %v384_v25  ;;  %v409_v28 = vpop.f32.mrf.mxu3 }
  0xb7   : > { %v357_v29 = vpop.f32.mrf.mxu0  ;;  %v886_v30 = vpop.eup %885  ;;  %v410_v31 = vadd.f32 %v1151_v49, %v409_v28 }
  0xb8   : > { %v483_v32 = vpack.c.bf16 %v886_v30, %v886_v30  ;;  %889 = vtanh.f32 %v385_v27  ;;  %v358_v34 = vadd.f32 %v1151_v49, %v357_v29  ;;  %v888_v35 = vpop.eup %887 }
  0xb9   : > { %891 = vtanh.f32 %v410_v31  ;;  %v473_v45 = vpack.c.bf16 %v888_v35, %v888_v35 }
  0xba   : > { %617 = vrot.lane.b32.xlu1 %v483_v32, %s1000_s17  ;;  %893 = vtanh.f32 %v358_v34 }
  0xbc   : > { %496 = vrot.lane.b32.xlu0 %v461_v33, %s1001_s23 }
  0xbd   : > { %v387_v37 = vpop.f32.mrf.mxu2 }
  0xbe   : > { %v890_v38 = vpop.eup %889  ;;  %v388_v39 = vadd.f32 %v1151_v49, %v387_v37  ;;  %v412_v41 = vpop.f32.mrf.mxu3 }
  0xbf   : > { %v359_v40 = vpop.f32.mrf.mxu0  ;;  %v892_v42 = vpop.eup %891  ;;  %v474_v43 = vpack.c.bf16 %v890_v38, %v890_v38  ;;  %v413_v47 = vadd.f32 %v1151_v49, %v412_v41 }
  0xc0   : > { %v484_v44 = vpack.c.bf16 %v892_v42, %v892_v42  ;;  %895 = vtanh.f32 %v388_v39  ;;  %v360_v46 = vadd.f32 %v1151_v49, %v359_v40  ;;  %v894_v48 = vpop.eup %893 }
  0xc1   : > { %897 = vtanh.f32 %v355_v36  ;;  %v463_v57 = vpack.c.bf16 %v894_v48, %v894_v48 }
  0xc2   : > { %564 = vrot.lane.b32.xlu1 %v474_v43, %s1002_s25  ;;  %619 = vrot.lane.b32.xlu2 %v484_v44, %s1000_s17  ;;  %899 = vtanh.f32 %v360_v46  ;;  %s218_s17 = sand.u32 1, %s987_s19  }
  0xc3   : > { %901 = vtanh.f32 %v413_v47 }
  0xc4   : > { %562 = vrot.lane.b32.xlu0 %v473_v45, %s1002_s25  ;;  %s801_s25 = sshll.u32 %s1064_s22, 3 }
  0xc5   : > { %v389_v50 = vpop.f32.mrf.mxu2 }
  0xc6   : > { %v896_v51 = vpop.eup %895  ;;  %v414_v53 = vpop.f32.mrf.mxu3  ;;  %v390_v62 = vadd.f32 %v1151_v49, %v389_v50 }
  0xc7   : > { %v362_v52 = vpop.f32.mrf.mxu0  ;;  %v898_v54 = vpop.eup %897  ;;  %v475_v55 = vpack.c.bf16 %v896_v51, %v896_v51  ;;  %v415_v59 = vadd.f32 %v1151_v49, %v414_v53 }
  0xc8   : > { %v363_v56 = vadd.f32 %v1151_v49, %v362_v52  ;;  %v462_v58 = vpack.c.bf16 %v898_v54, %v898_v54  ;;  %v900_v60 = vpop.eup %899 }
  0xc9   : > { %v902_v61 = vpop.eup %901  ;;  %v464_v4 = vpack.c.bf16 %v900_v60, %v900_v60 }
  0xca   : > { %903 = vtanh.f32 %v363_v56  ;;  %507 = vrot.lane.b32.xlu1 %v463_v57, %s1003_s26  ;;  %573 = vrot.lane.b32.xlu2 %v475_v55, %s1004_s30  ;;  %v485_v5 = vpack.c.bf16 %v902_v61, %v902_v61 }
  0xcb   : > { %905 = vtanh.f32 %v415_v59 }
  0xcc   : > { %498 = vrot.lane.b32.xlu0 %v462_v58, %s1001_s23  ;;  %907 = vtanh.f32 %v390_v62  ;;  %s771_s23 = sshll.u32 %s218_s17, 3 }
  0xcd   : > { %v392_v63 = vpop.f32.mrf.mxu2 }
  0xce   : > { %v417_v1 = vpop.f32.mrf.mxu3  ;;  %v393_v7 = vadd.f32 %v1151_v49, %v392_v63 }
  0xcf   : > { %v364_v0 = vpop.f32.mrf.mxu0  ;;  %v418_v3 = vadd.f32 %v1151_v49, %v417_v1 }
  0xd0   : > { %v904_v2 = vpop.eup %903  ;;  %v365_v8 = vadd.f32 %v1151_v49, %v364_v0 }
  0xd1   : > { %v465_v6 = vpack.c.bf16 %v904_v2, %v904_v2  ;;  %909 = vtanh.f32 %v418_v3  ;;  %v906_v9 = vpop.eup %905 }
  0xd2   : > { %509 = vrot.lane.b32.xlu1 %v464_v4, %s1003_s26  ;;  %v908_v13 = vpop.eup %907  ;;  %911 = vtanh.f32 %v393_v7  ;;  %v486_v16 = vpack.c.bf16 %v906_v9, %v906_v9 }
  0xd3   : > { %518 = vrot.lane.b32.xlu2 %v465_v6, %s1005_s6  ;;  %913 = vtanh.f32 %v365_v8  ;;  %v476_v18 = vpack.c.bf16 %v908_v13, %v908_v13 }
  0xd4   : > { %628 = vrot.lane.b32.xlu0 %v485_v5, %s1006_s7 }
  0xd5   : > { %v394_v10 = vpop.f32.mrf.mxu2 }
  0xd6   : > { %v419_v12 = vpop.f32.mrf.mxu3  ;;  %v395_v19 = vadd.f32 %v1151_v49, %v394_v10  ;;  %v662_v10 = vld [vmem:[%s1250_s4] sm:$0xff] }
  0xd7   : > { %v367_v11 = vpop.f32.mrf.mxu0  ;;  %v910_v15 = vpop.eup %909  ;;  %v420_v31 = vadd.f32 %v1151_v49, %v419_v12 }
  0xd8   : > { %v368_v14 = vadd.f32 %v1151_v49, %v367_v11  ;;  %v487_v17 = vpack.c.bf16 %v910_v15, %v910_v15  ;;  %v912_v20 = vpop.eup %911  ;;  %v1012_v11 = vmov 0  }
  0xd9   : > { %v914_v22 = vpop.eup %913  ;;  %v477_v28 = vpack.c.bf16 %v912_v20, %v912_v20  ;;  %865 = vset.pattern.permute.xlu0 %v1012_v11  ;;  %v659_v20 = vld [vmem:[%s1249_s3] sm:$0xf] }
  0xda   : > { %915 = vtanh.f32 %v368_v14  ;;  %630 = vrot.lane.b32.xlu1 %v486_v16, %s1006_s7  ;;  %v466_v30 = vpack.c.bf16 %v914_v22, %v914_v22  ;;  %s220_s7 = scalar_lea.vmem [#allocation3], %s771_s23 }
  0xdb   : > { %639 = vrot.lane.b32.xlu2 %v487_v17, %s1007_s8  ;;  %917 = vtanh.f32 %v395_v19 }
  0xdc   : > { %575 = vrot.lane.b32.xlu0 %v476_v18, %s1004_s30 }
  0xdd   : > { %v397_v21 = vpop.f32.mrf.mxu2 }
  0xde   : > { %v398_v23 = vadd.f32 %v1151_v49, %v397_v21  ;;  %v422_v25 = vpop.f32.mrf.mxu3 }
  0xdf   : > { %v369_v24 = vpop.f32.mrf.mxu0  ;;  %v423_v42 = vadd.f32 %v1151_v49, %v422_v25 }
  0xe0   : > { %v916_v26 = vpop.eup %915  ;;  %v370_v27 = vadd.f32 %v1151_v49, %v369_v24  ;;  %919 = vtanh.f32 %v398_v23 }
  0xe1   : > { %v467_v29 = vpack.c.bf16 %v916_v26, %v916_v26  ;;  %v918_v32 = vpop.eup %917 }
  0xe2   : > { %921 = vtanh.f32 %v370_v27  ;;  %584 = vrot.lane.b32.xlu1 %v477_v28, %s1008_s9  ;;  %v478_v41 = vpack.c.bf16 %v918_v32, %v918_v32 }
  0xe3   : > { %520 = vrot.lane.b32.xlu2 %v466_v30, %s1005_s6  ;;  %923 = vtanh.f32 %v420_v31  ;;  %s703_s6 = scalar_lea.hbm %s1251_s5, %s801_s25 }
  0xe4   : > { %529 = vrot.lane.b32.xlu0 %v467_v29, %s1009_s10 }
  0xe5   : > { %v399_v33 = vpop.f32.mrf.mxu2 }
  0xe6   : > { %v920_v34 = vpop.eup %919  ;;  %v400_v35 = vadd.f32 %v1151_v49, %v399_v33  ;;  %v424_v36 = vpop.f32.mrf.mxu3 }
  0xe7   : > { %v425_v38 = vadd.f32 %v1151_v49, %v424_v36  ;;  %v479_v39 = vpack.c.bf16 %v920_v34, %v920_v34 }
  0xe8   : > { %v922_v37 = vpop.eup %921  ;;  %925 = vtanh.f32 %v400_v35 }
  0xe9   : > { %v468_v40 = vpack.c.bf16 %v922_v37, %v922_v37  ;;  %927 = vtanh.f32 %v425_v38  ;;  %v924_v43 = vpop.eup %923 }
  0xea   : > { %929 = vtanh.f32 %v423_v42  ;;  %v488_v48 = vpack.c.bf16 %v924_v43, %v924_v43 }
  0xeb   : > { %531 = vrot.lane.b32.xlu1 %v468_v40, %s1009_s10  ;;  %586 = vrot.lane.b32.xlu2 %v478_v41, %s1008_s9  ;;  %s707_s9 = sshll.u32 %s703_s6, 4  ;;  %s693_s10 = scalar_lea.sflag [#allocation4], %s218_s17  ;;  %s708_s9 = int_to_ptr.hbm [resolvable:$true] %s707_s9 }
  0xec   : > { %595 = vrot.lane.b32.xlu0 %v479_v39, %s1010_s11 }
  0xee   : > { %v926_v44 = vpop.eup %925 }
  0xef   : > { %v928_v45 = vpop.eup %927  ;;  %v480_v46 = vpack.c.bf16 %v926_v44, %v926_v44 }
  0xf0   : > { %v490_v47 = vpack.c.bf16 %v928_v45, %v928_v45  ;;  %v930_v50 = vpop.eup %929 }
  0xf1   : > { %v489_v51 = vpack.c.bf16 %v930_v50, %v930_v50 }
  0xf3   : > { %597 = vrot.lane.b32.xlu1 %v480_v46, %s1010_s11  ;;  %652 = vrot.lane.b32.xlu2 %v490_v47, %s1011_s12  ;;  %s947_s11 = sshra.s32 %s708_s9, 4  ;;  %s948_s11 = int_to_ptr.hbm [resolvable:$true] %s947_s11 }
  0xf4   : > { %641 = vrot.lane.b32.xlu0 %v488_v48, %s1007_s8  ;;  %s705_s8 = sshll.u32 %s220_s7, 4  ;;  %s949_s22 = scalar_lea.hbm %s948_s11, 8  ;;  %s706_s8 = int_to_ptr.vmem [resolvable:$true] %s705_s8 }
  0xf5   : > { %p950_p11 = scmp.ne.s32.totalorder %s948_s11, %s949_s22  ;;  %p954_p0 = scmp.lt.s32.totalorder %s948_s11, %s1251_s5 }
  0xf6   : > { %p955_p1 = scmp.lt.s32.totalorder %s953_s14, %s949_s22 }
  0xf7   : > { %p951_p12 = pnand %p950_p11, %p1081_p5 }
  0xf8   : > { %p956_p2 = por %p955_p1, %p954_p0 }
  0xf9   : > { %p952_p13 = pneg %p951_p12 }
  0xfb   : > { %650 = vrot.lane.b32.xlu1 %v489_v51, %s1011_s12  ;;  %p957_p3 = pnand %p956_p2, %p952_p13 }
  0xfc   : > { %665 = vperm.xlu0 %865, %v662_v10  }
  0xfd   : > { %v541_v49 = vpop.permute.xlu2 %540 }
 0x105   : > { %v607_v52 = vpop.permute.xlu2 %606 }
 0x10d   : > { %v554_v53 = vpop.permute.xlu2 %553 }
 0x11b   : > { %v552_v56 = vpop.permute.xlu1 %551 }
 0x11c   : > { %v620_v55 = vpop.permute.xlu2 %619 }
 0x11e   : > { %v543_v54 = vpop.permute.xlu0 %542 }
 0x124   : > { %v574_v58 = vpop.permute.xlu2 %573 }
 0x126   : > { %v609_v57 = vpop.permute.xlu0 %608 }
 0x12c   : > { %v618_v59 = vpop.permute.xlu1 %617 }
 0x12d   : > { %v519_v61 = vpop.permute.xlu2 %518 }
 0x12e   : > { %v497_v60 = vpop.permute.xlu0 %496 }
 0x12f   : > { %503 = vst.msk [vmem:[#allocation2] sm:$0xf] %vm502_vm2, %v497_v60 }
 0x134   : > { %v565_v62 = vpop.permute.xlu1 %564 }
 0x135   : > { %v640_v0 = vpop.permute.xlu2 %639 }
 0x136   : > { %v563_v63 = vpop.permute.xlu0 %562 }
 0x13c   : > { %v508_v1 = vpop.permute.xlu1 %507 }
 0x13d   : > { %514 = vst.msk [vmem:[#allocation2] sm:$0xf] %vm513_vm3, %v508_v1  ;;  %v521_v4 = vpop.permute.xlu2 %520 }
 0x13e   : > { %v499_v2 = vpop.permute.xlu0 %498  ;;  %525 = vst.msk [vmem:[#allocation2] sm:$0xf] %vm524_vm4, %v519_v61 }
 0x13f   : > { %504 = vst.msk [vmem:[#allocation2 + $0x4] sm:$0xf] %vm502_vm2, %v499_v2 }
 0x144   : > { %v510_v3 = vpop.permute.xlu1 %509 }
 0x145   : > { %515 = vst.msk [vmem:[#allocation2 + $0x4] sm:$0xf] %vm513_vm3, %v510_v3  ;;  %v587_v14 = vpop.permute.xlu2 %586 }
 0x146   : > { %v629_v5 = vpop.permute.xlu0 %628  ;;  %526 = vst.msk [vmem:[#allocation2 + $0x4] sm:$0xf] %vm524_vm4, %v521_v4 }
 0x14c   : > { %v631_v6 = vpop.permute.xlu1 %630 }
 0x14d   : > { %v653_v17 = vpop.permute.xlu2 %652 }
 0x14e   : > { %v576_v7 = vpop.permute.xlu0 %575 }
 0x154   : > { %v585_v8 = vpop.permute.xlu1 %584 }
 0x156   : > { %v530_v9 = vpop.permute.xlu0 %529 }
 0x157   : > { %536 = vst.msk [vmem:[#allocation2] sm:$0xf] %vm535_vm5, %v530_v9 }
 0x158   : > { %547 = vst.msk [vmem:[#allocation2] sm:$0xf] %vm546_vm6, %v541_v49 }
 0x159   : > { %558 = vst.msk [vmem:[#allocation2] sm:$0xf] %vm557_vm7, %v552_v56 }
 0x15a   : > { %569 = vst.msk [vmem:[#allocation2] sm:$0xf] %vm568_vm8, %v563_v63 }
 0x15b   : > { %580 = vst.msk [vmem:[#allocation2] sm:$0xf] %vm579_vm9, %v574_v58 }
 0x15c   : > { %591 = vst.msk [vmem:[#allocation2] sm:$0xf] %vm590_vm10, %v585_v8 }
 0x15d   : > { %v532_v12 = vpop.permute.xlu1 %531 }
 0x15e   : > { %537 = vst.msk [vmem:[#allocation2 + $0x4] sm:$0xf] %vm535_vm5, %v532_v12  ;;  %v596_v13 = vpop.permute.xlu0 %595 }
 0x15f   : > { %548 = vst.msk [vmem:[#allocation2 + $0x4] sm:$0xf] %vm546_vm6, %v543_v54 }
 0x160   : > { %559 = vst.msk [vmem:[#allocation2 + $0x4] sm:$0xf] %vm557_vm7, %v554_v53 }
 0x161   : > { %602 = vst.msk [vmem:[#allocation2] sm:$0xf] %vm601_vm11, %v596_v13 }
 0x162   : > { %613 = vst.msk [vmem:[#allocation2] sm:$0xf] %vm612_vm12, %v607_v52 }
 0x163   : > { %624 = vst.msk [vmem:[#allocation2] sm:$0xf] %vm623_vm13, %v618_v59 }
 0x164   : > { %570 = vst.msk [vmem:[#allocation2 + $0x4] sm:$0xf] %vm568_vm8, %v565_v62 }
 0x165   : > { %v598_v15 = vpop.permute.xlu1 %597  ;;  %581 = vst.msk [vmem:[#allocation2 + $0x4] sm:$0xf] %vm579_vm9, %v576_v7 }
 0x166   : > { %592 = vst.msk [vmem:[#allocation2 + $0x4] sm:$0xf] %vm590_vm10, %v587_v14  ;;  %v642_v16 = vpop.permute.xlu0 %641 }
 0x167   : > { %603 = vst.msk [vmem:[#allocation2 + $0x4] sm:$0xf] %vm601_vm11, %v598_v15 }
 0x168   : > { %614 = vst.msk [vmem:[#allocation2 + $0x4] sm:$0xf] %vm612_vm12, %v609_v57 }
 0x169   : > { %625 = vst.msk [vmem:[#allocation2 + $0x4] sm:$0xf] %vm623_vm13, %v620_v55 }
 0x16a   : > { %636 = vst.msk [vmem:[#allocation2 + $0x4] sm:$0xf] %vm634_vm14, %v631_v6 }
 0x16b   : > { %647 = vst.msk [vmem:[#allocation2 + $0x4] sm:$0xf] %vm645_vm1, %v642_v16 }
 0x16c   : > { %658 = vst.msk [vmem:[#allocation2 + $0x4] sm:$0xf] %vm656_vm15, %v653_v17 }
 0x16d   : > { %635 = vst.msk [vmem:[#allocation2] sm:$0xf] %vm634_vm14, %v629_v5  ;;  %v651_v18 = vpop.permute.xlu1 %650 }
 0x16e   : > { %646 = vst.msk [vmem:[#allocation2] sm:$0xf] %vm645_vm1, %v640_v0  ;;  %v666_v21 = vpop.permute.xlu0 %665 }
 0x16f   : > { %657 = vst.msk [vmem:[#allocation2] sm:$0xf] %vm656_vm15, %v651_v18 }
 0x176   : > { %v806_v19 = vld [vmem:[#allocation2] sm:$0xff] }
 0x177   : > { %684 = vmatpush.bf16.msrb.mxu1 %v806_v19 }
 0x17a   : > { %799 = vmatmul.msk.bf16.vlgmr.msrb.gmra.mxu1 %vm289_vm0, %v659_v20 }
 0x1f7   : > { %v686_v22 = vpop.f32.mrf.mxu1 }
 0x1f8   : > { %v687_v23 = vadd.f32 %v686_v22, %v666_v21 }
 0x1fa   : > { %931 = vtanh.f32 %v687_v23 }
 0x1ff   : > { %v688_v24 = vpop.f32.mrf.mxu1 }
 0x200   : > { %v932_v25 = vpop.eup %931 }
 0x201   : > { %691 = vst [vmem:[%s220_s7] sm:$0xff] %v932_v25 }
 0x202   : > { %960 = shalt.err (!%p957_p3)
}
 0x203   : > { %810 = dma.vmem_to_hbm [thread:$0]  (%p1081_p5), %s706_s8, 128, %s708_s9, %s693_s10  }
 0x204 PF: > { %p816_p4 = scmp.ge.s32.totalorder %s995_s21, 2  ;;  %s719_s17 = sand.u32 1, %s983_s18  }
 0x205   : > { %s720_s23 = scalar_lea.sflag [#allocation4], %s719_s17 }
 0x206   : > { %p813_p7 = pnand %p816_p4, %p1085_p6 }
 0x208   : > { %p814_p8 = pneg %p813_p7 }
 0x20a   : > { %978 = dma.done.wait (%p814_p8), %s720_s23, 128  }
 0x20b   : > { %980 = vsyncadd (%p814_p8), %s720_s23, 4294967168  ;;  %p15_p9 = scmp.ge.s32.totalorder %s1068_s24, 4   ;;  %s1254_s18 = smov %s987_s19 }
 0x20c   : > { %s1255_s19 = smov %s991_s20  ;;  %s1256_s20 = smov %s1079_s27 }
 0x20d   : > { %s1257_s21 = smov %s1068_s24  ;;  %17 = sbr.rel (!%p15_p9) target bundleno = 3 (0x3), region = 75 }
 0x212   :  { %726 = vsyncpa [#allocation4], 1 }
 0x213   :  { %728 = vsyncpa [#allocation4 + $0x1], 1 }

</bundles_post_ra>
